<compile_context>
chip_gen: v6e
topology: v6e:2x2x1
jax: 0.10.0
libtpu: 0.0.40
codegen_flags: <defaults>
</compile_context>

<pallas_src>
import jax
import jax.numpy as jnp
from jax.experimental import pallas as pl
from jax.experimental.pallas import tpu as pltpu


def _round_up(x: int, m: int) -> int:
    return ((x + m - 1) // m) * m


def make_mlp_kernel(n_feature: int, use_vpu_first_layer: bool):
    """Build the fused (Linear -> ReLU -> Linear) kernel body."""

    def mlp_kernel(x_ref, w1_ref, b1_ref, w2_ref, b2_ref, o_ref):
        x = x_ref[...]          # (TB, F)
        w1 = w1_ref[...]        # (F, Hp)
        b1 = b1_ref[...]        # (1, Hp)

        if use_vpu_first_layer:
            # K = F is tiny (2 here): a K=2 MXU contraction uses <1% of the
            # systolic array and still pays push/pop latency.  Do it as F
            # broadcast FMAs on the VPU instead (unrolled at trace time).
            h = b1  # (1, Hp) broadcasts up on first add
            acc = jnp.zeros((x.shape[0], w1.shape[1]), jnp.float32)
            for f in range(n_feature):
                acc = acc + x[:, f:f + 1] * w1[f:f + 1, :]
            h = acc + b1
        else:
            h = jnp.dot(x, w1, preferred_element_type=jnp.float32) + b1

        # ReLU on the VPU.
        h = jnp.maximum(h, 0.0)

        # Second layer: (TB, Hp) @ (Hp, Op) on the MXU, f32 accumulation.
        y = jnp.dot(h, w2_ref[...], preferred_element_type=jnp.float32)
        y = y + b2_ref[...]     # (TB, Op) + (1, Op)
        o_ref[...] = y.astype(o_ref.dtype)

    return mlp_kernel


def net_forward(x, w1, b1, w2, b2, *, batch_tile: int = 512):
    """y = relu(x @ w1 + b1) @ w2 + b2  (weights stored as (in, out))."""
    B, F = x.shape
    H = w1.shape[1]
    O = w2.shape[1]

    # Lane-dense padding of the hidden / output feature dims.
    Hp = _round_up(max(H, 1), 128)
    Op = _round_up(max(O, 1), 128)

    w1p = jnp.zeros((F, Hp), jnp.float32).at[:, :H].set(w1)
    b1p = jnp.zeros((1, Hp), jnp.float32).at[:, :H].set(b1.reshape(1, H))
    w2p = jnp.zeros((Hp, Op), jnp.float32).at[:H, :O].set(w2)
    b2p = jnp.zeros((1, Op), jnp.float32).at[:, :O].set(b2.reshape(1, O))

    # Batch tile: cap at `batch_tile`, keep sublane (8) alignment, pad B.
    TB = min(batch_tile, _round_up(B, 8))
    Bp = _round_up(B, TB)
    xp = x if Bp == B else jnp.zeros((Bp, F), x.dtype).at[:B, :].set(x)

    grid = (Bp // TB,)
    kernel = make_mlp_kernel(F, use_vpu_first_layer=(F <= 8))

    out_padded = pl.pallas_call(
        kernel,
        out_shape=jax.ShapeDtypeStruct((Bp, Op), jnp.float32),
        grid=grid,
        in_specs=[
            # Streamed per batch tile (double-buffered by the pipeline).
            pl.BlockSpec((TB, F), lambda i: (i, 0)),
            # Weights / biases: same block every step -> VMEM-resident.
            pl.BlockSpec((F, Hp), lambda i: (0, 0)),
            pl.BlockSpec((1, Hp), lambda i: (0, 0)),
            pl.BlockSpec((Hp, Op), lambda i: (0, 0)),
            pl.BlockSpec((1, Op), lambda i: (0, 0)),
        ],
        out_specs=pl.BlockSpec((TB, Op), lambda i: (i, 0)),
        compiler_params=pltpu.CompilerParams(
            dimension_semantics=("parallel",),      # shards across TCs on v7x
            vmem_limit_bytes=32 * 1024 * 1024,      # explicit, safe on 64 MiB v7x
        ),
    )(xp, w1p, b1p, w2p, b2p)

    # Strip batch + lane padding outside the kernel.
    return out_padded[:B, :O]


def init_params(key, n_feature, n_hidden, n_out):
    # Mimic torch.nn.Linear's uniform(-1/sqrt(fan_in), 1/sqrt(fan_in)) init.
    k1, k2, k3, k4 = jax.random.split(key, 4)
    bound1 = 1.0 / jnp.sqrt(n_feature)
    bound2 = 1.0 / jnp.sqrt(n_hidden)
    # Stored as (in, out) = PyTorch weight.T so the kernel computes x @ W + b.
    w1 = jax.random.uniform(k1, (n_feature, n_hidden), jnp.float32, -bound1, bound1)
    b1 = jax.random.uniform(k2, (1, n_hidden), jnp.float32, -bound1, bound1)
    w2 = jax.random.uniform(k3, (n_hidden, n_out), jnp.float32, -bound2, bound2)
    b2 = jax.random.uniform(k4, (1, n_out), jnp.float32, -bound2, bound2)
    return w1, b1, w2, b2


if __name__ == "__main__":
    key = jax.random.PRNGKey(0)
    k0, k1, k_params = jax.random.split(key, 3)

    # Small shapes consistent with the module: 2-D points, hidden=32, 2 classes.
    batch, n_feature, n_hidden, n_out = 8, 2, 32, 2

    # Two-cluster data like the original script (means at +2 / -2),
    # with independent noise per cluster.
    half = batch // 2
    x0 = 2.0 + jax.random.normal(k0, (half, n_feature), jnp.float32)
    x1 = -2.0 + jax.random.normal(k1, (half, n_feature), jnp.float32)
    x = jnp.concatenate([x0, x1], axis=0)

    w1, b1, w2, b2 = init_params(k_params, n_feature, n_hidden, n_out)

    out = net_forward(x, w1, b1, w2, b2)
    out = jax.block_until_ready(out)

    # Reference check in plain JAX (same math as the PyTorch forward).
    ref = jnp.maximum(x @ w1 + b1, 0.0) @ w2 + b2
    assert out.shape == (batch, n_out)
    assert jnp.allclose(out, ref, atol=1e-5, rtol=1e-5)

    print("KERNEL_OK")
</pallas_src>

<mosaic_0001>
module attributes {stable_mosaic.version = 11 : i64} {
  func.func @mlp_kernel(%arg0: i32, %arg1: memref<8x2xf32, #tpu.memory_space<vmem>>, %arg2: memref<2x128xf32, #tpu.memory_space<vmem>>, %arg3: memref<1x128xf32, #tpu.memory_space<vmem>>, %arg4: memref<128x128xf32, #tpu.memory_space<vmem>>, %arg5: memref<1x128xf32, #tpu.memory_space<vmem>>, %arg6: memref<8x128xf32, #tpu.memory_space<vmem>>) attributes {dimension_semantics = [#tpu.dimension_semantics<parallel>], iteration_bounds = array<i64: 1>, scalar_prefetch = 0 : i64, scratch_operands = 0 : i64, tpu.core_type = #tpu.core_type<tc>, window_params = [{transform_indices = @transform_0, window_bounds = array<i64: 8, 2>}, {pipeline_mode = #tpu.pipeline_mode<synchronous>, transform_indices = @transform_1, window_bounds = array<i64: 2, 128>}, {pipeline_mode = #tpu.pipeline_mode<synchronous>, transform_indices = @transform_2, window_bounds = array<i64: 1, 128>}, {pipeline_mode = #tpu.pipeline_mode<synchronous>, transform_indices = @transform_3, window_bounds = array<i64: 128, 128>}, {pipeline_mode = #tpu.pipeline_mode<synchronous>, transform_indices = @transform_4, window_bounds = array<i64: 1, 128>}, {transform_indices = @transform_5, window_bounds = array<i64: 8, 128>}]} {
    %c0 = arith.constant 0 : index
    %c0_0 = arith.constant 0 : index
    %0 = vector.load %arg1[%c0, %c0_0] : memref<8x2xf32, #tpu.memory_space<vmem>>, vector<8x2xf32>
    %c0_1 = arith.constant 0 : index
    %c0_2 = arith.constant 0 : index
    %1 = vector.load %arg2[%c0_1, %c0_2] : memref<2x128xf32, #tpu.memory_space<vmem>>, vector<2x128xf32>
    %c0_3 = arith.constant 0 : index
    %c0_4 = arith.constant 0 : index
    %2 = vector.load %arg3[%c0_3, %c0_4] : memref<1x128xf32, #tpu.memory_space<vmem>>, vector<1x128xf32>
    %cst = arith.constant 0.000000e+00 : f32
    %3 = vector.broadcast %cst : f32 to vector<8x128xf32>
    %4 = vector.extract_strided_slice %0 {offsets = [0, 0], sizes = [8, 1], strides = [1, 1]} : vector<8x2xf32> to vector<8x1xf32>
    %5 = vector.extract_strided_slice %1 {offsets = [0, 0], sizes = [1, 128], strides = [1, 1]} : vector<2x128xf32> to vector<1x128xf32>
    %6 = vector.broadcast %4 : vector<8x1xf32> to vector<8x128xf32>
    %7 = vector.broadcast %5 : vector<1x128xf32> to vector<8x128xf32>
    %8 = arith.mulf %6, %7 : vector<8x128xf32>
    %9 = arith.addf %3, %8 : vector<8x128xf32>
    %10 = vector.extract_strided_slice %0 {offsets = [0, 1], sizes = [8, 1], strides = [1, 1]} : vector<8x2xf32> to vector<8x1xf32>
    %11 = vector.extract_strided_slice %1 {offsets = [1, 0], sizes = [1, 128], strides = [1, 1]} : vector<2x128xf32> to vector<1x128xf32>
    %12 = vector.broadcast %10 : vector<8x1xf32> to vector<8x128xf32>
    %13 = vector.broadcast %11 : vector<1x128xf32> to vector<8x128xf32>
    %14 = arith.mulf %12, %13 : vector<8x128xf32>
    %15 = arith.addf %9, %14 : vector<8x128xf32>
    %16 = vector.broadcast %2 : vector<1x128xf32> to vector<8x128xf32>
    %17 = arith.addf %15, %16 : vector<8x128xf32>
    %cst_5 = arith.constant 0.000000e+00 : f32
    %18 = vector.broadcast %cst_5 : f32 to vector<8x128xf32>
    %19 = arith.maximumf %17, %18 : vector<8x128xf32>
    %c0_6 = arith.constant 0 : index
    %c0_7 = arith.constant 0 : index
    %20 = vector.load %arg4[%c0_6, %c0_7] : memref<128x128xf32, #tpu.memory_space<vmem>>, vector<128x128xf32>
    %cst_8 = arith.constant dense<0.000000e+00> : vector<8x128xf32>
    %21 = tpu.matmul %19, %20, %cst_8 {dimension_numbers = #tpu.dot_dimension_numbers<[1], [0], [0], [1], [0, 0, 1, 1], [], []>} : vector<8x128xf32>, vector<128x128xf32>, vector<8x128xf32> -> vector<8x128xf32>
    %c0_9 = arith.constant 0 : index
    %c0_10 = arith.constant 0 : index
    %22 = vector.load %arg5[%c0_9, %c0_10] : memref<1x128xf32, #tpu.memory_space<vmem>>, vector<1x128xf32>
    %23 = vector.broadcast %22 : vector<1x128xf32> to vector<8x128xf32>
    %24 = arith.addf %21, %23 : vector<8x128xf32>
    %c0_11 = arith.constant 0 : index
    %c0_12 = arith.constant 0 : index
    %25 = vector.load %arg6[%c0_11, %c0_12] : memref<8x128xf32, #tpu.memory_space<vmem>>, vector<8x128xf32>
    tpu.vector_store %arg6[%c0_11, %c0_12], %24 {strides = array<i32>} : memref<8x128xf32, #tpu.memory_space<vmem>>, vector<8x128xf32>,
    return
  }
  func.func @transform_0(%arg0: i32) -> (i32, i32) {
    %c0_i32 = arith.constant 0 : i32
    %c0_i32_0 = arith.constant 0 : i32
    return %arg0, %c0_i32 : i32, i32
  }
  func.func @transform_1(%arg0: i32) -> (i32, i32) {
    %c0_i32 = arith.constant 0 : i32
    %c0_i32_0 = arith.constant 0 : i32
    %c0_i32_1 = arith.constant 0 : i32
    return %c0_i32, %c0_i32_0 : i32, i32
  }
  func.func @transform_2(%arg0: i32) -> (i32, i32) {
    %c0_i32 = arith.constant 0 : i32
    %c0_i32_0 = arith.constant 0 : i32
    %c0_i32_1 = arith.constant 0 : i32
    return %c0_i32, %c0_i32_0 : i32, i32
  }
  func.func @transform_3(%arg0: i32) -> (i32, i32) {
    %c0_i32 = arith.constant 0 : i32
    %c0_i32_0 = arith.constant 0 : i32
    %c0_i32_1 = arith.constant 0 : i32
    return %c0_i32, %c0_i32_0 : i32, i32
  }
  func.func @transform_4(%arg0: i32) -> (i32, i32) {
    %c0_i32 = arith.constant 0 : i32
    %c0_i32_0 = arith.constant 0 : i32
    %c0_i32_1 = arith.constant 0 : i32
    return %c0_i32, %c0_i32_0 : i32, i32
  }
  func.func @transform_5(%arg0: i32) -> (i32, i32) {
    %c0_i32 = arith.constant 0 : i32
    %c0_i32_0 = arith.constant 0 : i32
    return %arg0, %c0_i32 : i32, i32
  }
}

</mosaic_0001>

<bundles_post_ra>
// kernel: tpu_custom_call.1
= control target key start
LH: loop header
LB: loop body
LE: loop exit
PB: predicated region body
PF: predicated region fallthrough
CT: control target
= control target key end

     0   :  { %10 = vsyncpa [#allocation3], 0  ;;  %s340_s0 = inlined_call_operand.vmem [shape: f32[8,2], index: 0, kind: input, shape index: {}]   ;;  %s341_s1 = inlined_call_operand.vmem [shape: f32[2,128], index: 1, kind: input, shape index: {}]   ;;  %s342_s2 = inlined_call_operand.vmem [shape: f32[1,128], index: 2, kind: input, shape index: {}]   ;;  %s343_s3 = inlined_call_operand.hbm [shape: f32[128,128], index: 3, kind: input, shape index: {}]   ;;  %s344_s4 = inlined_call_operand.vmem [shape: f32[1,128], index: 4, kind: input, shape index: {}]   ;;  %s345_s5 = inlined_call_operand.hbm [shape: f32[8,128], index: 5, kind: output, shape index: {}]  }
   0x1   :  { %11 = vsyncpa [#allocation4], 0  ;;  %s284_s18 = smov [#allocation2]  }
   0x2   :  { %s23_s19 = sshll.u32 %s284_s18, 4  ;;  %s24_s19 = int_to_ptr.vmem [resolvable:$true] %s23_s19 }
   0x3   :  { %s248_s20 = scalar_lea.vmem %s24_s19, 2048  ;;  %p253_p1 = scmp.lt.s32.totalorder %s24_s19, %s24_s19 }
   0x4   :  { %p249_p0 = scmp.ne.s32.totalorder %s24_s19, %s248_s20  ;;  %p254_p2 = scmp.lt.s32.totalorder %s248_s20, %s248_s20 }
   0x6   :  { %p255_p3 = por %p254_p2, %p253_p1 }
   0x8   :  { %p256_p4 = pnand %p255_p3, %p249_p0 }
   0xa   :  { %259 = shalt.err (!%p256_p4)
}
   0xb   :  { %s285_s21 = smov 128   ;;  %s286_s22 = smov 8  }
   0xc   :  { %29 = dma.hbm_to_vmem [thread:$0]  %s343_s3, 2048, %s24_s19, [#allocation3], %s285_s21, %s285_s21, %s286_s22  }
   0xd   :  { %280 = dma.done.wait [#allocation3], 2048  }
   0xe   :  { %281 = vsyncadd [#allocation3], 4294965248  ;;  %v287_v0 = vmov 0   ;;  %v288_v1 = vmov 0.0   ;;  %v35_v2 = vld [vmem:[%s340_s0] sm:$0xff]  ;;  %v82_v3 = vld [vmem:[#allocation2 + $0x78] sm:$0xff]  ;;  %v43_v20 = vlaneseq }
   0xf   :  { %238 = vset.pattern.permute.xlu0 %v287_v0  ;;  %195 = vmatprep.subr.mxu0 %v288_v1  ;;  %v81_v4 = vld [vmem:[#allocation2 + $0x70] sm:$0xff]  ;;  %v80_v5 = vld [vmem:[#allocation2 + $0x68] sm:$0xff]  ;;  %v79_v6 = vld [vmem:[#allocation2 + $0x60] sm:$0xff]  ;;  %v289_v7 = vmov 1   ;;  %vm290_vm0 = vmmov 0   ;;  %s291_s6 = smov [#allocation5]  }
  0x10   :  { %40 = vperm.xlu0 %238, %v35_v2   ;;  %196 = vmatpush3.msra.mxu0 %v82_v3  ;;  %v78_v8 = vld [vmem:[#allocation2 + $0x58] sm:$0xff]  ;;  %v77_v9 = vld [vmem:[#allocation2 + $0x50] sm:$0xff]  ;;  %v76_v10 = vld [vmem:[#allocation2 + $0x48] sm:$0xff]  ;;  %v44_v21 = vshrl.u32 %v43_v20, 7 }
  0x11   :  { %197 = vmatprep.subr.mxu0 %v288_v1  ;;  %227 = vmatprep.mubr.msk.f32.mxu0 %vm290_vm0, %v288_v1  ;;  %v75_v11 = vld [vmem:[#allocation2 + $0x40] sm:$0xff]  ;;  %v74_v12 = vld [vmem:[#allocation2 + $0x38] sm:$0xff]  ;;  %v73_v13 = vld [vmem:[#allocation2 + $0x30] sm:$0xff] }
  0x12   :  { %198 = vmatpush3.msra.mxu0 %v81_v4  ;;  %v72_v14 = vld [vmem:[#allocation2 + $0x28] sm:$0xff]  ;;  %v71_v15 = vld [vmem:[#allocation2 + $0x20] sm:$0xff]  ;;  %v70_v16 = vld [vmem:[#allocation2 + $0x18] sm:$0xff]  ;;  %v45_v22 = vsub.s32 0, %v44_v21  ;;  %v55_v23 = vsub.s32 1, %v44_v21 }
  0x13   :  { %199 = vmatprep.subr.mxu0 %v288_v1  ;;  %v69_v17 = vld [vmem:[#allocation2 + $0x10] sm:$0xff]  ;;  %v68_v18 = vld [vmem:[#allocation2 + $0x8] sm:$0xff]  ;;  %v67_v19 = vld [vmem:[#allocation2] sm:$0xff] }
  0x14   :  { %239 = vset.pattern.permute.xlu0 %v289_v7  ;;  %200 = vmatpush3.msra.mxu0 %v80_v5  ;;  %v36_v24 = vld [vmem:[%s341_s1] sm:$0x3]  ;;  %s167_s1 = sshll.u32 %s291_s6, 4  ;;  %s168_s1 = int_to_ptr.vmem [resolvable:$true] %s167_s1 }
  0x15   :  { %50 = vperm.xlu0 %239, %v35_v2   ;;  %201 = vmatprep.subr.mxu0 %v288_v1  ;;  %v46_v26 = vrot.slane %v36_v24, %v45_v22  ;;  %v56_v27 = vrot.slane %v36_v24, %v55_v23  ;;  %v176_v31 = vld [vmem:[%s342_s2] ss:$0 sm:$0xff]  ;;  %s260_s7 = scalar_lea.vmem %s168_s1, 128  ;;  %p265_p6 = scmp.lt.s32.totalorder %s168_s1, %s168_s1 }
  0x16   :  { %202 = vmatpush3.msra.mxu0 %v79_v6  ;;  %v177_v35 = vld [vmem:[%s344_s4] ss:$0 sm:$0xff]  ;;  %p261_p5 = scmp.ne.s32.totalorder %s168_s1, %s260_s7  ;;  %p266_p7 = scmp.lt.s32.totalorder %s260_s7, %s260_s7 }
  0x17   :  { %203 = vmatprep.subr.mxu0 %v288_v1 }
  0x18   :  { %204 = vmatpush3.msra.mxu0 %v78_v8  ;;  %p267_p8 = por %p266_p7, %p265_p6 }
  0x19   :  { %205 = vmatprep.subr.mxu0 %v288_v1 }
  0x1a   :  { %206 = vmatpush3.msra.mxu0 %v77_v9  ;;  %p268_p9 = pnand %p267_p8, %p261_p5 }
  0x1b   :  { %207 = vmatprep.subr.mxu0 %v288_v1 }
  0x1c   :  { %208 = vmatpush3.msra.mxu0 %v76_v10 }
  0x1d   :  { %209 = vmatprep.subr.mxu0 %v288_v1 }
  0x1e   :  { %210 = vmatpush3.msra.mxu0 %v75_v11 }
  0x1f   :  { %211 = vmatprep.subr.mxu0 %v288_v1 }
  0x20   :  { %212 = vmatpush3.msra.mxu0 %v74_v12 }
  0x21   :  { %213 = vmatprep.subr.mxu0 %v288_v1 }
  0x22   :  { %214 = vmatpush3.msra.mxu0 %v73_v13 }
  0x23   :  { %215 = vmatprep.subr.mxu0 %v288_v1 }
  0x24   :  { %216 = vmatpush3.msra.mxu0 %v72_v14 }
  0x25   :  { %217 = vmatprep.subr.mxu0 %v288_v1 }
  0x26   :  { %218 = vmatpush3.msra.mxu0 %v71_v15 }
  0x27   :  { %219 = vmatprep.subr.mxu0 %v288_v1 }
  0x28   :  { %220 = vmatpush3.msra.mxu0 %v70_v16 }
  0x29   :  { %221 = vmatprep.subr.mxu0 %v288_v1 }
  0x2a   :  { %222 = vmatpush3.msra.mxu0 %v69_v17 }
  0x2b   :  { %223 = vmatprep.subr.mxu0 %v288_v1 }
  0x2c   :  { %224 = vmatpush3.msra.mxu0 %v68_v18 }
  0x2d   :  { %225 = vmatprep.subr.mxu0 %v288_v1 }
  0x2e   :  { %226 = vmatpush3.msra.mxu0 %v67_v19 }
  0x8b   :  { %v41_v25 = vpop.permute.xlu0 %40 }
  0x8c   :  { %v47_v29 = vmul.f32 %v46_v26, %v41_v25 }
  0x90   :  { %v51_v28 = vpop.permute.xlu0 %50 }
  0x91   :  { %v57_v30 = vmul.f32 %v56_v27, %v51_v28 }
  0x93   :  { %v58_v32 = vadd.f32 %v57_v30, %v47_v29 }
  0x95   :  { %v65_v33 = vadd.f32 %v176_v31, %v58_v32 }
  0x97   :  { %v66_v34 = vmax.f32 %v65_v33, 0.0 }
  0x99   :  { %228 = vmatmul.mubr.f32.vlgmr.msra.gmra.mxu0 %v66_v34 }
 0x159   :  { %v156_v36 = vpop.f32.mrf.mxu0 }
 0x15a   :  { %v157_v37 = vadd.f32 %v177_v35, %v156_v36 }
 0x15b   :  { %v229_v38 = vpop.f32.mrf.mxu0 }
 0x15c   :  { %160 = vst [vmem:[#allocation5] sm:$0xff] %v157_v37 }
 0x15d   :  { %271 = shalt.err (!%p268_p9)
}
 0x15e   :  { %170 = dma.vmem_to_hbm [thread:$0]  %s168_s1, 128, %s345_s5, [#allocation4]  }
 0x15f   :  { %282 = dma.done.wait [#allocation4], 128  }
 0x160   :  { %283 = vsyncadd [#allocation4], 4294967168 }
 0x161   :  { %174 = vsyncpa [#allocation3], 1 }
 0x162   :  { %175 = vsyncpa [#allocation4], 1 }

</bundles_post_ra>
